<compile_context>
chip_gen: v7x
topology: tpu7x:2x2x1
jax: 0.10.0
libtpu: 0.0.40
codegen_flags: <defaults>
</compile_context>

<pallas_src>
import jax
import jax.numpy as jnp
from jax.experimental import pallas as pl
from jax.experimental.pallas import tpu as pltpu


def _round_up(n, m):
    return ((n + m - 1) // m) * m


def _row_tiling(m, max_tile=256):
    """Pick (tile, padded_m) with tile | padded_m, tile <= max_tile.

    Small extents use a single full-extent block (always legal); large ragged
    extents are padded up to a multiple of 128 so the grid keeps >= 2 steps and
    the weight DMAs stay hidden behind the pipeline.
    """
    if m <= max_tile:
        return m, m
    for t in (max_tile, 128):
        if m % t == 0:
            return t, m
    m_pad = _round_up(m, 128)
    for t in (max_tile, 128):
        if m_pad % t == 0:
            return t, m_pad
    return 128, m_pad


def _compiler_params(tile_rows, d_in, d_out, n_grid_axes):
    """dimension_semantics + a VMEM limit derived from the actual block sizes."""
    bpe = 2  # bf16
    vmem_need = (2 * tile_rows * d_in * bpe      # activation tile, double-buffered
                 + 2 * tile_rows * d_out * bpe   # output tile, double-buffered
                 + 2 * d_in * d_in * bpe         # W1 block, double-buffered
                 + 2 * d_in * d_out * bpe        # W2 block, double-buffered
                 + tile_rows * d_in * 4)         # fp32 ReLU intermediate
    # >= default scoped limit, but always below v7x's 64 MiB physical VMEM.
    vmem_limit = int(min(max(2 * vmem_need, 32 << 20), 56 << 20))
    return pltpu.CompilerParams(
        dimension_semantics=("parallel",) * n_grid_axes,
        vmem_limit_bytes=vmem_limit)


def _cost_estimate(rows, d_in, d_out):
    return pl.CostEstimate(
        flops=2 * rows * d_in * (d_in + d_out),
        transcendentals=0,
        bytes_accessed=2 * (rows * d_in + d_in * d_in + d_in * d_out + rows * d_out))


# ---------------------------------------------------------------------------
# Kernels
# ---------------------------------------------------------------------------
def _mlp_kernel_rows(x_ref, w1t_ref, w2t_ref, o_ref):
    # Row-major path:  out = relu(x @ W1^T) @ W2^T
    # x_ref : (tile_m, D_in) bf16, w1t_ref: (D_in, D_in), w2t_ref: (D_in, D_out)
    h = jnp.dot(x_ref[...], w1t_ref[...], preferred_element_type=jnp.float32)
    h = jnp.maximum(h, 0.0)                      # ReLU on the VPU, fp32
    o_ref[...] = jnp.dot(h.astype(jnp.bfloat16), w2t_ref[...],
                         preferred_element_type=jnp.float32).astype(o_ref.dtype)


def _mlp_kernel_cols(x_ref, w1_ref, w2_ref, o_ref):
    # Channel-major path ('down_proj'/'o_proj'):  out = W2 @ relu(W1 @ X)
    # x_ref : (D_in, tile_s) bf16, w1_ref: (D_in, D_in), w2_ref: (D_out, D_in)
    h = jnp.dot(w1_ref[...], x_ref[...], preferred_element_type=jnp.float32)
    h = jnp.maximum(h, 0.0)
    o_ref[...] = jnp.dot(w2_ref[...], h.astype(jnp.bfloat16),
                         preferred_element_type=jnp.float32).astype(o_ref.dtype)


# ---------------------------------------------------------------------------
# pallas_call wrappers
# ---------------------------------------------------------------------------
def mlp_rows_pallas(x2d, w1t, w2t, *, max_tile=256):
    """relu(x2d @ w1t) @ w2t.  x2d: (M, D_in) bf16; returns (M, D_out) bf16."""
    m, d_in = x2d.shape
    d_out = w2t.shape[-1]
    tile_m, m_pad = _row_tiling(m, max_tile)
    if m_pad != m:
        x2d = jnp.pad(x2d, ((0, m_pad - m), (0, 0)))
    out = pl.pallas_call(
        _mlp_kernel_rows,
        out_shape=jax.ShapeDtypeStruct((m_pad, d_out), jnp.bfloat16),
        grid=(m_pad // tile_m,),
        in_specs=[
            pl.BlockSpec((tile_m, d_in), lambda i: (i, 0)),
            pl.BlockSpec((d_in, d_in), lambda i: (0, 0)),
            pl.BlockSpec((d_in, d_out), lambda i: (0, 0)),
        ],
        out_specs=pl.BlockSpec((tile_m, d_out), lambda i: (i, 0)),
        compiler_params=_compiler_params(tile_m, d_in, d_out, 1),
        cost_estimate=_cost_estimate(m_pad, d_in, d_out),
    )(x2d, w1t, w2t)
    return out[:m] if m_pad != m else out


def mlp_cols_pallas(x3d, w1, w2, *, max_tile=256):
    """Per-batch W2 @ relu(W1 @ X).  x3d: (B, D_in, S) bf16; returns (B, D_out, S)."""
    b, d_in, s = x3d.shape
    d_out = w2.shape[0]
    tile_s, s_pad = _row_tiling(s, max_tile)
    if s_pad != s:
        x3d = jnp.pad(x3d, ((0, 0), (0, 0), (0, s_pad - s)))
    out = pl.pallas_call(
        _mlp_kernel_cols,
        out_shape=jax.ShapeDtypeStruct((b, d_out, s_pad), jnp.bfloat16),
        grid=(b, s_pad // tile_s),
        in_specs=[
            pl.BlockSpec((None, d_in, tile_s), lambda bi, si: (bi, 0, si)),
            pl.BlockSpec((d_in, d_in), lambda bi, si: (0, 0)),
            pl.BlockSpec((d_out, d_in), lambda bi, si: (0, 0)),
        ],
        out_specs=pl.BlockSpec((None, d_out, tile_s), lambda bi, si: (bi, 0, si)),
        compiler_params=_compiler_params(tile_s, d_in, d_out, 2),
        cost_estimate=_cost_estimate(b * s_pad, d_in, d_out),
    )(x3d, w1, w2)
    return out[:, :, :s] if s_pad != s else out


# ---------------------------------------------------------------------------
# Module
# ---------------------------------------------------------------------------
class KnowledgeTranslator:
    """JAX/Pallas port of the torch Knowledge_translator module."""

    _TRANSPOSED = ('down_proj', 'o_proj')   # processed channel-major
    _MIN_PALLAS_ROWS = 2048                 # below this plain XLA wins (toy sizes)

    def __init__(self, translate_modules, n_layers, input_dim, output_dim, key,
                 *, max_tile=256):
        self.model_mapping = {'down_proj': 'mlp', 'up_proj': 'mlp',
                              'v_proj': 'self_attn', 'o_proj': 'self_attn'}
        self.n_layers = n_layers
        self.input_dim = input_dim
        self.output_dim = output_dim
        self.max_tile = max_tile
        self.module_order = tuple(translate_modules)

        # torch nn.Linear init: weight (out_features, in_features), N(0, 1e-5^2)
        weights = {}
        for m in self.module_order:
            key, k1, k2 = jax.random.split(key, 3)
            w1 = 1e-5 * jax.random.normal(k1, (input_dim, input_dim), jnp.float32)
            w2 = 1e-5 * jax.random.normal(k2, (output_dim, input_dim), jnp.float32)
            weights[m] = (w1, w2)
        self.load_weights(weights)

    def load_weights(self, weights):
        """weights[m] = (W1, W2) in torch layout (out_features, in_features), fp32."""
        self.fp32_weights = dict(weights)
        self._kernel_weights = {}
        for m, (w1, w2) in weights.items():
            if m in self._TRANSPOSED:
                # channel-major kernel computes W2 @ relu(W1 @ X): torch layout as-is
                self._kernel_weights[m] = (jnp.asarray(w1, jnp.bfloat16),
                                           jnp.asarray(w2, jnp.bfloat16))
            else:
                # row-major kernel computes relu(X @ W1^T) @ W2^T: pre-transpose once
                self._kernel_weights[m] = (jnp.asarray(w1).T.astype(jnp.bfloat16),
                                           jnp.asarray(w2).T.astype(jnp.bfloat16))

    def __call__(self, x, source_idxs=None, *, use_pallas="auto"):
        # source_idxs is unused in the reference forward pass.
        result = {}
        for k, v in x.items():
            wa, wb = self._kernel_weights[k]
            transposed = k in self._TRANSPOSED
            if transposed:
                B, D, S = v.shape
            else:
                B, S, D = v.shape
            assert D == self.input_dim
            rows = B * S
            run_pallas = (use_pallas == "always"
                          or (use_pallas == "auto"
                              and rows >= self._MIN_PALLAS_ROWS
                              and self.input_dim >= 128))

            if run_pallas:
                if transposed:
                    o = mlp_cols_pallas(v.astype(jnp.bfloat16), wa, wb,
                                        max_tile=self.max_tile)      # (B, D_out, S)
                else:
                    x2d = v.astype(jnp.bfloat16).reshape(rows, D)
                    o = mlp_rows_pallas(x2d, wa, wb, max_tile=self.max_tile)
                    o = o.reshape(B, S, self.output_dim)
            else:
                # Small-problem fallback: one fused XLA pass, fp32 like torch.
                w1, w2 = self.fp32_weights[k]
                if transposed:
                    h = jnp.maximum(jnp.einsum('oi,bis->bos', w1,
                                               v.astype(jnp.float32)), 0.0)
                    o = jnp.einsum('oi,bis->bos', w2, h)
                else:
                    h = jnp.maximum(v.astype(jnp.float32) @ w1.T, 0.0)
                    o = h @ w2.T
            result[k] = o.astype(jnp.float16)
        return result


def _torch_style_reference(x, fp32_weights):
    """Pure-JAX fp32 reference mirroring the torch forward exactly."""
    result = {}
    for k, v in x.items():
        w1, w2 = fp32_weights[k]            # torch layout: (out, in)
        v_r = jnp.swapaxes(v, 1, 2) if k in ('down_proj', 'o_proj') else v
        h = jnp.maximum(v_r.astype(jnp.float32) @ w1.T, 0.0)
        o = (h @ w2.T).astype(jnp.float16)
        if k in ('down_proj', 'o_proj'):
            o = jnp.swapaxes(o, 1, 2)
        result[k] = o
    return result


if __name__ == "__main__":
    key = jax.random.PRNGKey(0)

    translate_modules = ['down_proj', 'up_proj', 'v_proj', 'o_proj']
    n_layers = 2
    input_dim = 32    # teacher hidden dim
    output_dim = 16   # student hidden dim
    B, S = 2, 8

    key, kp = jax.random.split(key)
    translator = KnowledgeTranslator(translate_modules, n_layers,
                                     input_dim, output_dim, kp)

    # The spec's std=1e-5 init makes outputs ~1e-7, so any absolute-tolerance
    # check would be vacuous.  Load larger-scale weights (same layout/semantics)
    # so the bf16 kernel path is meaningfully validated against fp32.
    key, kw = jax.random.split(key)
    test_weights = {}
    for m in translate_modules:
        kw, k1, k2 = jax.random.split(kw, 3)
        test_weights[m] = (
            0.05 * jax.random.normal(k1, (input_dim, input_dim), jnp.float32),
            0.05 * jax.random.normal(k2, (output_dim, input_dim), jnp.float32))
    translator.load_weights(test_weights)

    # 'down_proj'/'o_proj' arrive as (B, hidden, seq); 'up_proj'/'v_proj' as
    # (B, seq, hidden) — matching the torch forward's transpose convention.
    key, kd, ku, kv, ko = jax.random.split(key, 5)
    x = {
        'down_proj': jax.random.normal(kd, (B, input_dim, S)).astype(jnp.float16),
        'up_proj':   jax.random.normal(ku, (B, S, input_dim)).astype(jnp.float16),
        'v_proj':    jax.random.normal(kv, (B, S, input_dim)).astype(jnp.float16),
        'o_proj':    jax.random.normal(ko, (B, input_dim, S)).astype(jnp.float16),
    }
    source_idxs = jnp.arange(n_layers)

    out = translator(x, source_idxs, use_pallas="always")   # exercise the kernels
    out = jax.block_until_ready(out)

    # shape / dtype parity with the torch semantics
    assert out['down_proj'].shape == (B, output_dim, S)
    assert out['o_proj'].shape == (B, output_dim, S)
    assert out['up_proj'].shape == (B, S, output_dim)
    assert out['v_proj'].shape == (B, S, output_dim)
    assert all(v.dtype == jnp.float16 for v in out.values())

    # numerical parity against a pure-JAX fp32 torch-style reference
    # (tolerance sized for the bf16-operand / fp32-accumulate kernel path)
    ref = _torch_style_reference(x, translator.fp32_weights)
    for k in x:
        o = out[k].astype(jnp.float32)
        r = ref[k].astype(jnp.float32)
        tol = 0.05 * float(jnp.max(jnp.abs(r))) + 1e-6
        err = float(jnp.max(jnp.abs(o - r)))
        assert err <= tol, f"mismatch for {k}: err={err:.3e} tol={tol:.3e}"

    print("KERNEL_OK")
</pallas_src>

<mosaic_0001>
module attributes {stable_mosaic.version = 11 : i64} {
  func.func @_mlp_kernel_cols(%arg0: i32, %arg1: i32, %arg2: memref<1x32x8xbf16, #tpu.memory_space<vmem>>, %arg3: memref<32x32xbf16, #tpu.memory_space<vmem>>, %arg4: memref<16x32xbf16, #tpu.memory_space<vmem>>, %arg5: memref<1x16x8xbf16, #tpu.memory_space<vmem>>) attributes {dimension_semantics = [#tpu.dimension_semantics<parallel>, #tpu.dimension_semantics<parallel>], iteration_bounds = array<i64: 2, 1>, scalar_prefetch = 0 : i64, scratch_operands = 0 : i64, tpu.core_type = #tpu.core_type<tc>, window_params = [{transform_indices = @transform_0, window_bounds = array<i64: 1, 32, 8>}, {pipeline_mode = #tpu.pipeline_mode<synchronous>, transform_indices = @transform_1, window_bounds = array<i64: 32, 32>}, {pipeline_mode = #tpu.pipeline_mode<synchronous>, transform_indices = @transform_2, window_bounds = array<i64: 16, 32>}, {transform_indices = @transform_3, window_bounds = array<i64: 1, 16, 8>}]} {
    %c0 = arith.constant 0 : index
    %c0_0 = arith.constant 0 : index
    %0 = vector.load %arg3[%c0, %c0_0] : memref<32x32xbf16, #tpu.memory_space<vmem>>, vector<32x32xbf16>
    %c0_1 = arith.constant 0 : index
    %c0_2 = arith.constant 0 : index
    %c0_3 = arith.constant 0 : index
    %1 = vector.load %arg2[%c0_1, %c0_2, %c0_3] : memref<1x32x8xbf16, #tpu.memory_space<vmem>>, vector<1x32x8xbf16>
    %2 = vector.shape_cast %1 : vector<1x32x8xbf16> to vector<32x8xbf16>
    %cst = arith.constant dense<0.000000e+00> : vector<32x8xf32>
    %3 = tpu.matmul %0, %2, %cst {dimension_numbers = #tpu.dot_dimension_numbers<[1], [0], [0], [1], [0, 0, 1, 1], [], []>} : vector<32x32xbf16>, vector<32x8xbf16>, vector<32x8xf32> -> vector<32x8xf32>
    %cst_4 = arith.constant 0.000000e+00 : f32
    %4 = vector.broadcast %cst_4 : f32 to vector<32x8xf32>
    %5 = arith.maximumf %3, %4 : vector<32x8xf32>
    %c0_5 = arith.constant 0 : index
    %c0_6 = arith.constant 0 : index
    %6 = vector.load %arg4[%c0_5, %c0_6] : memref<16x32xbf16, #tpu.memory_space<vmem>>, vector<16x32xbf16>
    %7 = arith.truncf %5 : vector<32x8xf32> to vector<32x8xbf16>
    %cst_7 = arith.constant dense<0.000000e+00> : vector<16x8xf32>
    %8 = tpu.matmul %6, %7, %cst_7 {dimension_numbers = #tpu.dot_dimension_numbers<[1], [0], [0], [1], [0, 0, 1, 1], [], []>} : vector<16x32xbf16>, vector<32x8xbf16>, vector<16x8xf32> -> vector<16x8xf32>
    %9 = arith.truncf %8 : vector<16x8xf32> to vector<16x8xbf16>
    %c0_8 = arith.constant 0 : index
    %c0_9 = arith.constant 0 : index
    %c0_10 = arith.constant 0 : index
    %10 = vector.load %arg5[%c0_8, %c0_9, %c0_10] : memref<1x16x8xbf16, #tpu.memory_space<vmem>>, vector<1x16x8xbf16>
    %11 = vector.shape_cast %10 : vector<1x16x8xbf16> to vector<16x8xbf16>
    %12 = vector.shape_cast %9 : vector<16x8xbf16> to vector<1x16x8xbf16>
    tpu.vector_store %arg5[%c0_8, %c0_9, %c0_10], %12 {strides = array<i32>} : memref<1x16x8xbf16, #tpu.memory_space<vmem>>, vector<1x16x8xbf16>,
    return
  }
  func.func @transform_0(%arg0: i32, %arg1: i32) -> (i32, i32, i32) {
    %c0_i32 = arith.constant 0 : i32
    %c0_i32_0 = arith.constant 0 : i32
    return %arg0, %c0_i32, %arg1 : i32, i32, i32
  }
  func.func @transform_1(%arg0: i32, %arg1: i32) -> (i32, i32) {
    %c0_i32 = arith.constant 0 : i32
    %c0_i32_0 = arith.constant 0 : i32
    %c0_i32_1 = arith.constant 0 : i32
    return %c0_i32, %c0_i32_0 : i32, i32
  }
  func.func @transform_2(%arg0: i32, %arg1: i32) -> (i32, i32) {
    %c0_i32 = arith.constant 0 : i32
    %c0_i32_0 = arith.constant 0 : i32
    %c0_i32_1 = arith.constant 0 : i32
    return %c0_i32, %c0_i32_0 : i32, i32
  }
  func.func @transform_3(%arg0: i32, %arg1: i32) -> (i32, i32, i32) {
    %c0_i32 = arith.constant 0 : i32
    %c0_i32_0 = arith.constant 0 : i32
    return %arg0, %c0_i32, %arg1 : i32, i32, i32
  }
}

</mosaic_0001>

<bundles_post_ra>
// kernel: tpu_custom_call.1
= control target key start
LH: loop header
LB: loop body
LE: loop exit
PB: predicated region body
PF: predicated region fallthrough
CT: control target
= control target key end

     0   :  { %s565_s12 = smov 0   ;;  %s567_s13 = smov 0   ;;  %s614_s0 = inlined_call_operand.vmem [shape: bf16[2,32,8], index: 0, kind: input, shape index: {}]   ;;  %s615_s1 = inlined_call_operand.vmem [shape: bf16[32,32], index: 1, kind: input, shape index: {}]   ;;  %s616_s2 = inlined_call_operand.vmem [shape: bf16[16,32], index: 2, kind: input, shape index: {}]   ;;  %s617_s3 = inlined_call_operand.vmem [shape: bf16[2,16,8], index: 3, kind: output, shape index: {}]  }
   0x1   :  { %s569_s14 = smov 0  }
   0x2 LB: > { %s25_s15 = sadd.s32 1, %s537_s13  ;;  %p444_p0 = scmp.ge.s32.totalorder %s541_s14, 1  ;;  %s541_s14 = sphi %s569_s14, %s13_s14   ;;  %s537_s13 = sphi %s567_s13, %s619_s13   ;;  %s533_s12 = sphi %s565_s12, %s618_s12  }
   0x3   : > { %p27_p1 = scmp.ge.s32.totalorder %s25_s15, 2  ;;  %p156_p2 = scmp.lt.s32.totalorder %s541_s14, 3 }
   0x5   : > { %s621_s15 = smov (%p27_p1, %s25_s15), 0  ;;  %p157_p3 = pnand %p444_p0, %p156_p2 }
   0x6   : > { %p186_p4 = scmp.lt.s32.totalorder (!%p157_p3), %s533_s12, 1  ;;  %v516_v0 = vld [vmem:[%s615_s1] sm:$0xff] (!%p157_p3)   ;;  %vm233_vm0 = vcmask (!%p157_p3), 261120   ;;  %v517_v3 = vld [vmem:[%s615_s1 + $0x8] sm:$0xff] (!%p157_p3)   ;;  %v543_v4 = vmov (!%p157_p3), 0.0   ;;  %vm544_vm1 = vmmov (!%p157_p3), 0  }
   0x7   : > { %160 = sbr.rel (%p157_p3) target bundleno = 469 (0x1d5), region = 32  ;;  %476 = vmatprep.mubr.msk.bf16.mxu0 (!%p157_p3), %vm233_vm0, %v516_v0  ;;  %480 = vmatprep.subr.bf16.mxu1 (!%p157_p3), %v543_v4  ;;  %v518_v15 = vld [vmem:[%s616_s2] sm:$0xff] (!%p157_p3)   ;;  %vm354_vm2 = vcmask (!%p157_p3), 60416  }
   0x8   : > { %484 = vmatprep.mubr.msk.bf16.mxu1 (!%p157_p3), %vm544_vm1, %v543_v4 }
   0xe   : > { %s623_s12 = smov (!%p186_p4, %s533_s12), 1 }
   0xf   : > { %s461_s18 = sshll.u32 %s623_s12, 4  ;;  %s462_s26 = sshll.u32 %s623_s12, 3 }
  0x10   : > { %s193_s21 = scalar_lea.vmem %s614_s0, %s461_s18  ;;  %s201_s29 = scalar_lea.vmem %s617_s3, %s462_s26 }
  0x11   : > { %v514_v1 = vld [vmem:[%s193_s21] sm:$0xff]   ;;  %v515_v2 = vld [vmem:[%s193_s21 + $0x8] sm:$0xff]  }
  0x12   : > { %472 = vmatprep.subr.bf16.mxu0 %v514_v1 }
  0x13   : > { %473 = vmatpush3.bf16.msra.mxu0 %v514_v1 }
  0x14   : > { %474 = vmatprep.subr.bf16.mxu0 %v515_v2 }
  0x17   : > { %475 = vmatpush3.bf16.msra.mxu0 %v515_v2 }
  0x1a   : > { %477 = vmatmul.mubr.msk.bf16.vlgmr.msra.gmra.mrb[0].mxu0 %vm233_vm0, %v517_v3 }
  0xed   : > { %v478_v5 = vpop.f32.mrb[0].mxu0 }
  0xee   : > { %v274_v6 = vpop.f32.mrb[1].mxu0  ;;  %v291_v8 = vmax.f32 %v478_v5, 0.0 }
  0xef   : > { %v479_v7 = vpop.f32.mrb[2].mxu0  ;;  %v289_v11 = vmax.f32 %v274_v6, 0.0 }
  0xf0   : > { %v292_v9 = vmax.f32 %v479_v7, 0.0  ;;  %v277_v10 = vpop.f32.mrb[3].mxu0 }
  0xf1   : > { %v290_v12 = vmax.f32 %v277_v10, 0.0 }
  0xf2   : > { %v296_v13 = vpack.c.bf16 %v292_v9, %v291_v8 }
  0xf3   : > { %v295_v14 = vpack.c.bf16 %v290_v12, %v289_v11 }
  0xf5   : > { %481 = vmatpush3.bf16.msra.mxu1 %v295_v14 }
  0xf6   : > { %482 = vmatprep.subr.bf16.mxu1 %v543_v4 }
  0xf9   : > { %483 = vmatpush3.bf16.msra.mxu1 %v296_v13 }
  0xfc   : > { %485 = vmatmul.mubr.msk.bf16.vlgmr.msra.gmra.mrb[0].mxu1 %vm233_vm0, %v518_v15 }
 0x1cf   : > { %v339_v16 = vpop.f32.mrb[0].mxu1 }
 0x1d0   : > { %v463_v17 = vpack.c.bf16 %v339_v16, %v339_v16  ;;  %v486_v18 = vpop.f32.mrb[1].mxu1 }
 0x1d1   : > { %v342_v19 = vpop.f32.mrb[2].mxu1 }
 0x1d2   : > { %355 = vst.msk [vmem:[%s201_s29] sm:$0xf] %vm354_vm2, %v463_v17  ;;  %v464_v20 = vpack.c.bf16 %v342_v19, %v342_v19  ;;  %v487_v21 = vpop.f32.mrb[3].mxu1 }
 0x1d4   : > { %356 = vst.msk [vmem:[%s201_s29 + $0x4] sm:$0xf] %vm354_vm2, %v464_v20 }
 0x1d5 PF: > { %s13_s14 = sadd.s32 1, %s541_s14   ;;  %s618_s12 = smov %s537_s13 }
 0x1d6   : > { %p10_p5 = scmp.ge.s32.totalorder %s13_s14, 4   ;;  %s619_s13 = smov %s621_s15 }
 0x1d8   :  { %12 = sbr.rel (!%p10_p5) target bundleno = 2 (0x2), region = 62 }

</bundles_post_ra>
